<compile_context>
chip_gen: v7x
topology: tpu7x:2x2x1
jax: 0.10.0
libtpu: 0.0.40
codegen_flags: <defaults>
</compile_context>

<pallas_src>
import functools

import jax
import jax.numpy as jnp
from jax.experimental import pallas as pl
from jax.experimental.pallas import tpu as pltpu


def _round_up(x: int, m: int) -> int:
    return ((x + m - 1) // m) * m


def _scaled_mse_head_kernel(x_ref, w_ref, stats_ref, debias_ref,
                            value_ref, denorm_ref, *, epsilon):
    # stats rows: 0 = bias, 1 = running_mean, 2 = running_mean_sq (rest zero pad).
    bias = stats_ref[0:1, :]            # (1, N_pad) lane vector
    rmean = stats_ref[1:2, :]
    rmean_sq = stats_ref[2:3, :]

    # --- fused NormalizeEwma.running_mean_var (tiny VPU math, per tile) ---
    debias = jnp.maximum(debias_ref[0], epsilon)        # scalar from SMEM
    inv_debias = 1.0 / debias
    mean = rmean * inv_debias
    mean_sq = rmean_sq * inv_debias
    var = jnp.maximum(mean_sq - mean * mean, 0.01)      # torch hard-codes 0.01 floor
    sqrt_var = jnp.sqrt(var)
    shift = bias * sqrt_var + mean                      # folded-bias shift

    # --- hot path: one MXU matmul + fused affine epilogue ---
    acc = jnp.dot(x_ref[...], w_ref[...], preferred_element_type=jnp.float32)
    value_ref[...] = (acc + bias).astype(value_ref.dtype)
    denorm_ref[...] = (acc * sqrt_var + shift).astype(denorm_ref.dtype)


def prepare_scaled_mse_head_params(weight, bias, running_mean, running_mean_sq):
    """One-time layout plumbing (do NOT call per forward).

    weight: [outsize, insize] (PyTorch convention).
    Returns:
      w_t   : [insize, N_pad]  pre-transposed, zero-padded to a 128-lane multiple
      stats : [8, N_pad]       rows 0..2 = bias, running_mean, running_mean_sq
    """
    outsize, insize = weight.shape
    n_pad = _round_up(max(outsize, 128), 128)
    w_t = jnp.zeros((insize, n_pad), jnp.float32)
    w_t = w_t.at[:, :outsize].set(jnp.asarray(weight, jnp.float32).T)
    stats = jnp.zeros((8, n_pad), jnp.float32)
    stats = stats.at[0, :outsize].set(jnp.asarray(bias, jnp.float32))
    stats = stats.at[1, :outsize].set(jnp.asarray(running_mean, jnp.float32))
    stats = stats.at[2, :outsize].set(jnp.asarray(running_mean_sq, jnp.float32))
    return w_t, stats


@functools.partial(jax.jit, static_argnames=("outsize", "epsilon"))
def scaled_mse_head_forward(x, w_t, stats, debiasing_term, *, outsize,
                            epsilon=0.01):
    """x: [B, insize]; w_t/stats from prepare_scaled_mse_head_params."""
    B, insize = x.shape
    n_pad = w_t.shape[1]

    # Batch tiling: multiples of 8 sublanes, up to 256 rows per grid step.
    tm = min(_round_up(B, 8), 256)
    b_pad = _round_up(B, tm)

    x_p = x.astype(jnp.float32)
    if b_pad != B:
        x_p = jnp.pad(x_p, ((0, b_pad - B), (0, 0)))
    debias = jnp.reshape(jnp.asarray(debiasing_term, jnp.float32), (1,))

    kernel = functools.partial(_scaled_mse_head_kernel, epsilon=float(epsilon))

    value_p, denorm_p = pl.pallas_call(
        kernel,
        grid=(pl.cdiv(b_pad, tm),),
        in_specs=[
            pl.BlockSpec((tm, insize), lambda i: (i, 0)),            # x tile
            pl.BlockSpec((insize, n_pad), lambda i: (0, 0)),         # weight (resident)
            pl.BlockSpec((8, n_pad), lambda i: (0, 0)),              # coalesced stats
            pl.BlockSpec(memory_space=pltpu.MemorySpace.SMEM),       # debiasing_term
        ],
        out_specs=(
            pl.BlockSpec((tm, n_pad), lambda i: (i, 0)),
            pl.BlockSpec((tm, n_pad), lambda i: (i, 0)),
        ),
        out_shape=(
            jax.ShapeDtypeStruct((b_pad, n_pad), jnp.float32),
            jax.ShapeDtypeStruct((b_pad, n_pad), jnp.float32),
        ),
        compiler_params=pltpu.CompilerParams(
            dimension_semantics=("parallel",)),
    )(x_p, w_t, stats, debias)

    # Slice off lane / batch padding (fused under jit).
    return value_p[:B, :outsize], denorm_p[:B, :outsize]


def _orthogonal_init(key, rows, cols, gain):
    # Deterministic orthogonal init (matches torch.nn.init.orthogonal_ semantics).
    flat = jax.random.normal(key, (max(rows, cols), min(rows, cols)),
                             dtype=jnp.float32)
    q, r = jnp.linalg.qr(flat)
    q = q * jnp.sign(jnp.diagonal(r))
    if rows < cols:
        q = q.T
    return gain * q[:rows, :cols]


if __name__ == "__main__":
    key = jax.random.PRNGKey(0)
    k_x, k_w = jax.random.split(key)

    B, insize, outsize = 8, 32, 16
    init_scale = 0.1
    epsilon = 0.01

    # Parameters, initialized exactly as the module's __init__ prescribes.
    weight = _orthogonal_init(k_w, outsize, insize, init_scale)   # [outsize, insize]
    bias = jnp.zeros((outsize,), jnp.float32)
    running_mean = jnp.zeros((outsize,), jnp.float32)
    running_mean_sq = jnp.zeros((outsize,), jnp.float32)
    debiasing_term = jnp.array(0.0, jnp.float32)

    x = jax.random.normal(k_x, (B, insize), dtype=jnp.float32)

    # One-time param preparation (transpose + pad + coalesce stats).
    w_t, stats = prepare_scaled_mse_head_params(
        weight, bias, running_mean, running_mean_sq)

    value, denorm = scaled_mse_head_forward(
        x, w_t, stats, debiasing_term, outsize=outsize, epsilon=epsilon)
    jax.block_until_ready((value, denorm))

    # Pure-JAX reference check (mirrors the torch module).
    ref_value = x @ weight.T + bias
    debias = jnp.maximum(debiasing_term, epsilon)
    mean = running_mean / debias
    var = jnp.maximum(running_mean_sq / debias - mean ** 2, 0.01)
    ref_denorm = ref_value * jnp.sqrt(var) + mean

    assert value.shape == (B, outsize) and denorm.shape == (B, outsize)
    assert jnp.allclose(value, ref_value, atol=1e-5, rtol=1e-5)
    assert jnp.allclose(denorm, ref_denorm, atol=1e-5, rtol=1e-5)
    print("KERNEL_OK")
</pallas_src>

<mosaic_0001>
module attributes {stable_mosaic.version = 11 : i64} {
  func.func @_scaled_mse_head_kernel(%arg0: i32, %arg1: memref<8x32xf32, #tpu.memory_space<vmem>>, %arg2: memref<32x128xf32, #tpu.memory_space<vmem>>, %arg3: memref<8x128xf32, #tpu.memory_space<vmem>>, %arg4: memref<1xf32, #tpu.memory_space<smem>>, %arg5: memref<8x128xf32, #tpu.memory_space<vmem>>, %arg6: memref<8x128xf32, #tpu.memory_space<vmem>>) attributes {dimension_semantics = [#tpu.dimension_semantics<parallel>], iteration_bounds = array<i64: 1>, scalar_prefetch = 0 : i64, scratch_operands = 0 : i64, tpu.core_type = #tpu.core_type<tc>, window_params = [{transform_indices = @transform_0, window_bounds = array<i64: 8, 32>}, {pipeline_mode = #tpu.pipeline_mode<synchronous>, transform_indices = @transform_1, window_bounds = array<i64: 32, 128>}, {pipeline_mode = #tpu.pipeline_mode<synchronous>, transform_indices = @transform_2, window_bounds = array<i64: 8, 128>}, {transform_indices = @transform_3, window_bounds = array<i64: 1>}, {transform_indices = @transform_4, window_bounds = array<i64: 8, 128>}, {transform_indices = @transform_5, window_bounds = array<i64: 8, 128>}]} {
    %c0 = arith.constant 0 : index
    %c0_0 = arith.constant 0 : index
    %0 = vector.load %arg3[%c0, %c0_0] : memref<8x128xf32, #tpu.memory_space<vmem>>, vector<1x128xf32>
    %c1 = arith.constant 1 : index
    %c0_1 = arith.constant 0 : index
    %1 = vector.load %arg3[%c1, %c0_1] : memref<8x128xf32, #tpu.memory_space<vmem>>, vector<1x128xf32>
    %c2 = arith.constant 2 : index
    %c0_2 = arith.constant 0 : index
    %2 = vector.load %arg3[%c2, %c0_2] : memref<8x128xf32, #tpu.memory_space<vmem>>, vector<1x128xf32>
    %c0_3 = arith.constant 0 : index
    %3 = memref.load %arg4[%c0_3] : memref<1xf32, #tpu.memory_space<smem>>
    %cst = arith.constant 0.00999999977 : f32
    %4 = arith.maximumf %3, %cst : f32
    %cst_4 = arith.constant 1.000000e+00 : f32
    %5 = arith.divf %cst_4, %4 : f32
    %6 = vector.broadcast %5 : f32 to vector<1x128xf32>
    %7 = arith.mulf %1, %6 : vector<1x128xf32>
    %8 = vector.broadcast %5 : f32 to vector<1x128xf32>
    %9 = arith.mulf %2, %8 : vector<1x128xf32>
    %10 = arith.mulf %7, %7 : vector<1x128xf32>
    %11 = arith.subf %9, %10 : vector<1x128xf32>
    %cst_5 = arith.constant 0.00999999977 : f32
    %12 = vector.broadcast %cst_5 : f32 to vector<1x128xf32>
    %13 = arith.maximumf %11, %12 : vector<1x128xf32>
    %14 = math.sqrt %13 : vector<1x128xf32>
    %15 = arith.mulf %0, %14 : vector<1x128xf32>
    %16 = arith.addf %15, %7 : vector<1x128xf32>
    %c0_6 = arith.constant 0 : index
    %c0_7 = arith.constant 0 : index
    %17 = vector.load %arg1[%c0_6, %c0_7] : memref<8x32xf32, #tpu.memory_space<vmem>>, vector<8x32xf32>
    %c0_8 = arith.constant 0 : index
    %c0_9 = arith.constant 0 : index
    %18 = vector.load %arg2[%c0_8, %c0_9] : memref<32x128xf32, #tpu.memory_space<vmem>>, vector<32x128xf32>
    %cst_10 = arith.constant dense<0.000000e+00> : vector<8x128xf32>
    %19 = tpu.matmul %17, %18, %cst_10 {dimension_numbers = #tpu.dot_dimension_numbers<[1], [0], [0], [1], [0, 0, 1, 1], [], []>} : vector<8x32xf32>, vector<32x128xf32>, vector<8x128xf32> -> vector<8x128xf32>
    %20 = vector.broadcast %0 : vector<1x128xf32> to vector<8x128xf32>
    %21 = arith.addf %19, %20 : vector<8x128xf32>
    %c0_11 = arith.constant 0 : index
    %c0_12 = arith.constant 0 : index
    %22 = vector.load %arg5[%c0_11, %c0_12] : memref<8x128xf32, #tpu.memory_space<vmem>>, vector<8x128xf32>
    tpu.vector_store %arg5[%c0_11, %c0_12], %21 {strides = array<i32>} : memref<8x128xf32, #tpu.memory_space<vmem>>, vector<8x128xf32>,
    %23 = vector.broadcast %14 : vector<1x128xf32> to vector<8x128xf32>
    %24 = arith.mulf %19, %23 : vector<8x128xf32>
    %25 = vector.broadcast %16 : vector<1x128xf32> to vector<8x128xf32>
    %26 = arith.addf %24, %25 : vector<8x128xf32>
    %c0_13 = arith.constant 0 : index
    %c0_14 = arith.constant 0 : index
    %27 = vector.load %arg6[%c0_13, %c0_14] : memref<8x128xf32, #tpu.memory_space<vmem>>, vector<8x128xf32>
    tpu.vector_store %arg6[%c0_13, %c0_14], %26 {strides = array<i32>} : memref<8x128xf32, #tpu.memory_space<vmem>>, vector<8x128xf32>,
    return
  }
  func.func @transform_0(%arg0: i32) -> (i32, i32) {
    %c0_i32 = arith.constant 0 : i32
    %c0_i32_0 = arith.constant 0 : i32
    return %arg0, %c0_i32 : i32, i32
  }
  func.func @transform_1(%arg0: i32) -> (i32, i32) {
    %c0_i32 = arith.constant 0 : i32
    %c0_i32_0 = arith.constant 0 : i32
    %c0_i32_1 = arith.constant 0 : i32
    return %c0_i32, %c0_i32_0 : i32, i32
  }
  func.func @transform_2(%arg0: i32) -> (i32, i32) {
    %c0_i32 = arith.constant 0 : i32
    %c0_i32_0 = arith.constant 0 : i32
    %c0_i32_1 = arith.constant 0 : i32
    return %c0_i32, %c0_i32_0 : i32, i32
  }
  func.func @transform_3(%arg0: i32) -> i32 {
    %c0_i32 = arith.constant 0 : i32
    %c0_i32_0 = arith.constant 0 : i32
    return %c0_i32 : i32
  }
  func.func @transform_4(%arg0: i32) -> (i32, i32) {
    %c0_i32 = arith.constant 0 : i32
    %c0_i32_0 = arith.constant 0 : i32
    return %arg0, %c0_i32 : i32, i32
  }
  func.func @transform_5(%arg0: i32) -> (i32, i32) {
    %c0_i32 = arith.constant 0 : i32
    %c0_i32_0 = arith.constant 0 : i32
    return %arg0, %c0_i32 : i32, i32
  }
}

</mosaic_0001>

<bundles_post_ra>
// kernel: scaled_mse_head_forward.1
= control target key start
LH: loop header
LB: loop body
LE: loop exit
PB: predicated region body
PF: predicated region fallthrough
CT: control target
= control target key end

     0   :  { %12 = vsyncpa [#allocation4], 0  ;;  %s439_s0 = inlined_call_operand.hbm [shape: f32[8,32], index: 0, kind: input, shape index: {}]   ;;  %s440_s1 = inlined_call_operand.hbm [shape: f32[32,128], index: 1, kind: input, shape index: {}]   ;;  %s441_s2 = inlined_call_operand.vmem [shape: f32[8,128], index: 2, kind: input, shape index: {}]   ;;  %s442_s3 = inlined_call_operand.<no memory space> [shape: f32[1], index: 3, kind: input, shape index: {}]   ;;  %s443_s4 = inlined_call_operand.hbm [shape: f32[8,128], index: 4, kind: output, shape index: {0}]   ;;  %s444_s5 = inlined_call_operand.hbm [shape: f32[8,128], index: 5, kind: output, shape index: {1}]  }
   0x1   :  { %13 = vsyncpa [#allocation7], 0 }
   0x2   :  { %14 = vsyncpa [#allocation5], 0 }
   0x3   :  { %15 = vsyncpa [#allocation10], 0  ;;  %s332_s18 = smov [#allocation3]   ;;  %s333_s20 = smov [#allocation6]  }
   0x4   :  { %s22_s19 = sshll.u32 %s332_s18, 4  ;;  %s31_s21 = sshll.u32 %s333_s20, 4  ;;  %s23_s19 = int_to_ptr.vmem [resolvable:$true] %s22_s19  ;;  %s372_s21 = int_to_ptr.vmem [resolvable:$true] %s31_s21 }
   0x5   :  { %s236_s24 = scalar_lea.hbm %s439_s0, 128 }
   0x6   :  { %p237_p0 = scmp.ne.s32.totalorder %s439_s0, %s236_s24  ;;  %p240_p1 = scmp.lt.u32.totalorder %s236_s24, %s439_s0 }
   0x8   :  { %p242_p2 = pnand %p240_p1, %p237_p0 }
   0xa   :  { %245 = shalt.err (!%p242_p2)
}
   0xb   :  { %s246_s29 = scalar_lea.vmem %s23_s19, 128  ;;  %p251_p4 = scmp.lt.s32.totalorder %s23_s19, %s23_s19 }
   0xc   :  { %p247_p3 = scmp.ne.s32.totalorder %s23_s19, %s246_s29  ;;  %p252_p5 = scmp.lt.s32.totalorder %s246_s29, %s246_s29 }
   0xe   :  { %p253_p6 = por %p252_p5, %p251_p4 }
  0x10   :  { %p254_p7 = pnand %p253_p6, %p247_p3 }
  0x12   :  { %257 = shalt.err (!%p254_p7)
}
  0x13   :  { %25 = dma.hbm_to_vmem [thread:$0]  %s439_s0, 128, %s23_s19, [#allocation4]  }
  0x14   :  { %s258_s9 = scalar_lea.hbm %s440_s1, 512 }
  0x15   :  { %p259_p8 = scmp.ne.s32.totalorder %s440_s1, %s258_s9  ;;  %p262_p9 = scmp.lt.u32.totalorder %s258_s9, %s440_s1 }
  0x17   :  { %p264_p10 = pnand %p262_p9, %p259_p8 }
  0x19   :  { %267 = shalt.err (!%p264_p10)
}
  0x1a   :  { %s268_s14 = scalar_lea.vmem %s372_s21, 512  ;;  %p273_p12 = scmp.lt.s32.totalorder %s372_s21, %s372_s21 }
  0x1b   :  { %p269_p11 = scmp.ne.s32.totalorder %s372_s21, %s268_s14  ;;  %p274_p13 = scmp.lt.s32.totalorder %s268_s14, %s268_s14 }
  0x1d   :  { %p275_p0 = por %p274_p13, %p273_p12 }
  0x1f   :  { %p276_p1 = pnand %p275_p0, %p269_p11 }
  0x21   :  { %279 = shalt.err (!%p276_p1)
}
  0x22   :  { %s334_s0 = smov 128   ;;  %s335_s15 = smov 8  }
  0x23   :  { %37 = dma.hbm_to_vmem [thread:$0]  %s440_s1, 512, %s372_s21, [#allocation7], %s334_s0, %s334_s0, %s335_s15  }
  0x24   :  { %324 = dma.done.wait [#allocation4], 128  }
  0x25   :  { %325 = vsyncadd [#allocation4], 4294967168 }
  0x26   :  { %326 = dma.done.wait [#allocation7], 512  }
  0x27   :  { %327 = vsyncadd [#allocation7], 4294966784  ;;  %v336_v0 = vmov 0.0|0.0   ;;  %vm337_vm0 = vmmov 0   ;;  %v338_v1 = vmov 0.0   ;;  %v72_v3 = vld [vmem:[#allocation6] sm:$0xff]  ;;  %v150_v23 = vlaneseq }
  0x28   :  { %214 = vmatprep.subr.bf16.mxu0 %v336_v0  ;;  %211 = vmatprep.mubr.msk.f32.mxu0 %vm337_vm0, %v338_v1  ;;  %s339_s18 = smov 0.01   ;;  %v73_v4 = vld [vmem:[#allocation6 + $0x8] sm:$0xff]  ;;  %v74_v5 = vld [vmem:[#allocation6 + $0x10] sm:$0xff]  ;;  %v75_v7 = vld [vmem:[#allocation6 + $0x18] sm:$0xff]  ;;  %vm76_vm1 = vcmask 261120  }
  0x29   :  { %s52_s22 = smax.f32 %s339_s18, %s442_s3  ;;  %v215_v6 = vpack.c.bf16 %v73_v4, %v72_v3  ;;  %v218_v8 = vpack.c.bf16 %v75_v7, %v74_v5  ;;  %v71_v10 = vld [vmem:[#allocation3] sm:$0xff]  ;;  %v151_v26 = vshrl.u32 %v150_v23, 7  ;;  %s340_s27 = smov [#allocation8]  }
  0x2a   :  { %v53_v2 = vstv %s52_s22  ;;  %v49_v11 = vld [vmem:[%s441_s2 + $0x1] sm:$0x1]  ;;  %v50_v14 = vld [vmem:[%s441_s2 + $0x2] sm:$0x1]  ;;  %v48_v24 = vld [vmem:[%s441_s2] sm:$0x1] }
  0x2b   :  { %232 = vrcp.f32 %v53_v2  ;;  %216 = vmatpush3.bf16.msra.mxu0 %v215_v6  ;;  %v152_v28 = vsub.s32 0, %v151_v26  ;;  %s173_s28 = sshll.u32 %s340_s27, 4  ;;  %s341_s29 = smov [#allocation9]   ;;  %s174_s28 = int_to_ptr.vmem [resolvable:$true] %s173_s28 }
  0x2c   :  { %217 = vmatprep.subr.bf16.mxu0 %v336_v0  ;;  %s183_s30 = sshll.u32 %s341_s29, 4  ;;  %s280_s2 = scalar_lea.vmem %s174_s28, 128  ;;  %s184_s30 = int_to_ptr.vmem [resolvable:$true] %s183_s30 }
  0x2d   :  { %v153_v30 = vrot.slane %v48_v24, %v152_v28  ;;  %p281_p2 = scmp.ne.s32.totalorder %s174_s28, %s280_s2  ;;  %p285_p3 = scmp.lt.s32.totalorder %s174_s28, %s174_s28 }
  0x2e   :  { %p286_p4 = scmp.lt.s32.totalorder %s280_s2, %s280_s2 }
  0x2f   :  { %219 = vmatpush3.bf16.msra.mxu0 %v218_v8 }
  0x30   :  { %p287_p5 = por %p286_p4, %p285_p3 }
  0x32   :  { %212 = vmatmul.mubr.msk.f32.vlgmr.msra.gmra.mrb[0].mxu0 %vm76_vm1, %v71_v10  ;;  %p288_p6 = pnand %p287_p5, %p281_p2 }
  0x35   :  { %v233_v9 = vpop.eup %232 }
  0x36   :  { %220 = vpush %v233_v9 }
  0x67   :  { %s221_s1 = spop %220 }
  0x68   :  { %v56_v12 = vstv %s221_s1 }
  0x69   :  { %v57_v13 = vmul.f32 %v56_v12, %v49_v11  ;;  %v58_v15 = vmul.f32 %v56_v12, %v50_v14 }
  0x6b   :  { %v59_v16 = vmul.f32 %v57_v13, %v57_v13 }
  0x6d   :  { %v60_v17 = vsub.f32 %v58_v15, %v59_v16 }
  0x6f   :  { %v61_v18 = vmax.f32 %v60_v17, 0.01 }
  0x71   :  { %234 = vrsqrt.f32 %v61_v18  ;;  %vm64_vm2 = vcmp.eq.f32.partialorder %v61_v18, inf  ;;  %v67_v21 = vand.u32 2147483648, %v61_v18  ;;  %vm66_vm3 = vcmp.eq.f32.partialorder %v61_v18, 0.0 }
  0x7b   :  { %v235_v19 = vpop.eup %234 }
  0x7c   :  { %v63_v20 = vmul.f32 %v235_v19, %v61_v18 }
  0x7e   :  { %v65_v22 = vsel %vm64_vm2, %v61_v18, %v63_v20 }
  0x7f   :  { %v68_v25 = vsel %vm66_vm3, %v67_v21, %v65_v22 }
  0x80   :  { %v69_v27 = vmul.f32 %v68_v25, %v48_v24  ;;  %v159_v31 = vrot.slane %v68_v25, %v152_v28 }
  0x82   :  { %v70_v29 = vadd.f32 %v69_v27, %v57_v13 }
  0x84   :  { %v164_v33 = vrot.slane %v70_v29, %v152_v28 }
 0x105   :  { %v146_v32 = vpop.f32.mrb[0].mxu0 }
 0x106   :  { %v154_v34 = vadd.f32 %v153_v30, %v146_v32  ;;  %v160_v35 = vmul.f32 %v159_v31, %v146_v32  ;;  %v213_v36 = vpop.f32.mrb[1].mxu0 }
 0x108   :  { %155 = vst [vmem:[#allocation8] sm:$0xff] %v154_v34  ;;  %v165_v37 = vadd.f32 %v164_v33, %v160_v35 }
 0x109   :  { %291 = shalt.err (!%p288_p6)
}
 0x10a   :  { %s292_s8 = scalar_lea.hbm %s443_s4, 128 }
 0x10b   :  { %p293_p7 = scmp.ne.s32.totalorder %s443_s4, %s292_s8  ;;  %p296_p8 = scmp.lt.u32.totalorder %s292_s8, %s443_s4 }
 0x10d   :  { %p298_p9 = pnand %p296_p8, %p293_p7 }
 0x10f   :  { %301 = shalt.err (!%p298_p9)
}
 0x110   :  { %176 = dma.vmem_to_hbm [thread:$0]  %s174_s28, 128, %s443_s4, [#allocation5]   ;;  %166 = vst [vmem:[#allocation9] sm:$0xff] %v165_v37 }
 0x111   :  { %s302_s0 = scalar_lea.vmem %s184_s30, 128  ;;  %p307_p11 = scmp.lt.s32.totalorder %s184_s30, %s184_s30 }
 0x112   :  { %p303_p10 = scmp.ne.s32.totalorder %s184_s30, %s302_s0  ;;  %p308_p12 = scmp.lt.s32.totalorder %s302_s0, %s302_s0 }
 0x114   :  { %p309_p13 = por %p308_p12, %p307_p11 }
 0x116   :  { %p310_p0 = pnand %p309_p13, %p303_p10 }
 0x118   :  { %313 = shalt.err (!%p310_p0)
}
 0x119   :  { %s314_s17 = scalar_lea.hbm %s444_s5, 128 }
 0x11a   :  { %p315_p1 = scmp.ne.s32.totalorder %s444_s5, %s314_s17  ;;  %p318_p2 = scmp.lt.u32.totalorder %s314_s17, %s444_s5 }
 0x11c   :  { %p320_p3 = pnand %p318_p2, %p315_p1 }
 0x11e   :  { %323 = shalt.err (!%p320_p3)
}
 0x11f   :  { %186 = dma.vmem_to_hbm [thread:$0]  %s184_s30, 128, %s444_s5, [#allocation10]  }
 0x120   :  { %328 = dma.done.wait [#allocation5], 128  }
 0x121   :  { %329 = vsyncadd [#allocation5], 4294967168 }
 0x122   :  { %330 = dma.done.wait [#allocation10], 128  }
 0x123   :  { %331 = vsyncadd [#allocation10], 4294967168 }
 0x124   :  { %193 = vsyncpa [#allocation4], 1 }
 0x125   :  { %194 = vsyncpa [#allocation7], 1 }
 0x126   :  { %195 = vsyncpa [#allocation5], 1 }
 0x127   :  { %196 = vsyncpa [#allocation10], 1 }

</bundles_post_ra>
